<compile_context>
chip_gen: v5e
topology: v5e:2x2
jax: 0.10.0
libtpu: 0.0.40
codegen_flags: <defaults>
</compile_context>

<pallas_src>
import functools

import jax
import jax.numpy as jnp
import numpy as np
from jax import lax
from jax.experimental import pallas as pl
from jax.experimental.pallas import tpu as pltpu

UNIFORM_SIGMA = 3.46
MIN_COV_EIGEN = 1e-8          # matches the PyTorch module default
LOG_2 = float(np.log(2.0))
LOG_2PI = float(np.log(2.0 * np.pi))


# ----------------------------------------------------------------------------
# Fused kernel: trunk + heads + cov + Cholesky + rsample + log_prob + squash
# ----------------------------------------------------------------------------
def _actor_fused_kernel(obs_ref, w1_ref, b1_ref, w2_ref, b2_ref,
                        wh_ref, bh_ref, act_lo_ref, act_hi_ref, noise_ref,
                        out_ref, *, act_dim, deterministic, with_logprob):
    A = act_dim
    B = obs_ref.shape[0]
    f32 = jnp.float32

    # ---- MLP trunk (RescaleInput already folded into w1/b1 at init) ----
    h = jnp.maximum(
        jnp.dot(obs_ref[...], w1_ref[...], preferred_element_type=f32) + b1_ref[...],
        0.0)
    h = jnp.maximum(
        jnp.dot(h, w2_ref[...], preferred_element_type=f32) + b2_ref[...],
        0.0)

    # ---- single fused head matmul: y[:, :A] = mu, y[:, A:] = m (row-major) ----
    y = jnp.dot(h, wh_ref[...], preferred_element_type=f32) + bh_ref[...]

    mu2d = y[:, :A]                                          # (B, A)
    m = [y[:, A + c:A + c + 1] for c in range(A * A)]        # (B, 1) columns of m
    nz = [noise_ref[:, i:i + 1] for i in range(A)]           # (B, 1) noise columns

    # ---- cov = m^T @ m + eps*I  (lower triangle only; eps folded into diag) ----
    def cov_entry(i, j):                                      # i >= j
        s = m[0 * A + i] * m[0 * A + j]
        for k in range(1, A):
            s = s + m[k * A + i] * m[k * A + j]
        if i == j:
            s = s + f32(MIN_COV_EIGEN)
        return s

    # ---- unrolled Cholesky (Cholesky-Banachiewicz) on (B, 1) columns ----
    L = [[None] * A for _ in range(A)]
    for i in range(A):
        for j in range(i + 1):
            s = cov_entry(i, j)
            for k in range(j):
                s = s - L[i][k] * L[j][k]
            L[i][j] = jnp.sqrt(s) if i == j else s / L[j][j]

    # ---- rsample: a = mu + L @ noise ----
    if deterministic:
        a = mu2d
        delta = None
    else:
        delta = []                                            # (L @ noise)_i, (B, 1)
        for i in range(A):
            d = L[i][0] * nz[0]
            for j in range(1, i + 1):
                d = d + L[i][j] * nz[j]
            delta.append(d)
        # Scatter (B,1) deltas into their lanes with one-hot masks (keeps the
        # final store lane-dense without unaligned minor-dim concatenation).
        lane = lax.broadcasted_iota(jnp.int32, (1, A), 1)
        a = mu2d
        for i in range(A):
            a = a + jnp.where(lane == i, delta[i], 0.0)

    # ---- MultivariateNormal log_prob + tanh-squash correction ----
    if with_logprob:
        if deterministic:
            maha = jnp.zeros((B, 1), f32)                     # a - mu == 0
        else:
            # forward substitution  sol = L^{-1} (a - mu),  with a - mu == delta
            sol = []
            for i in range(A):
                d = delta[i]
                for j in range(i):
                    d = d - L[i][j] * sol[j]
                sol.append(d / L[i][i])
            maha = sol[0] * sol[0]
            for i in range(1, A):
                maha = maha + sol[i] * sol[i]

        half_log_det = jnp.log(L[0][0])
        for i in range(1, A):
            half_log_det = half_log_det + jnp.log(L[i][i])

        logp = -0.5 * (f32(A * LOG_2PI) + maha) - half_log_det

        # stable softplus: sp(x) = max(x, 0) + log(1 + exp(-|x|))  (one exp + one log)
        x = -2.0 * a
        sp = jnp.maximum(x, 0.0) + jnp.log(1.0 + jnp.exp(-jnp.abs(x)))
        corr = 2.0 * (f32(LOG_2) - a - sp)
        logp = logp - jnp.sum(corr, axis=1, keepdims=True)    # (B, 1)
    else:
        logp = jnp.zeros((B, 1), f32)

    # ---- tanh squash + rescale to action bounds; packed (B, A+1) output ----
    t = jnp.tanh(a)
    action = act_lo_ref[...] + 0.5 * (t + 1.0) * (act_hi_ref[...] - act_lo_ref[...])
    out_ref[:, :A] = action
    out_ref[:, A:A + 1] = logp


# ----------------------------------------------------------------------------
# Wrapper (single pallas_call, jitted)
# ----------------------------------------------------------------------------
def _forward_impl(params, obs, noise, deterministic, with_logprob):
    A = params["act_lo"].shape[-1]
    B = obs.shape[0]
    vmem = pl.BlockSpec(memory_space=pltpu.MemorySpace.VMEM)
    packed = pl.pallas_call(
        functools.partial(_actor_fused_kernel, act_dim=A,
                          deterministic=deterministic, with_logprob=with_logprob),
        out_shape=jax.ShapeDtypeStruct((B, A + 1), jnp.float32),
        in_specs=[vmem] * 10,
        out_specs=vmem,
    )(obs, params["w1"], params["b1"], params["w2"], params["b2"],
      params["wh"], params["bh"], params["act_lo"], params["act_hi"], noise)
    action = packed[:, :A]
    logp = packed[:, A] if with_logprob else None
    return action, logp


squashed_gaussian_actor_forward = jax.jit(
    _forward_impl, static_argnames=("deterministic", "with_logprob"))


# ----------------------------------------------------------------------------
# Parameter init (raw, PyTorch-like) and one-time prep transform
# ----------------------------------------------------------------------------
def init_params(key, obs_dim, hidden_sizes, act_dim):
    h1, h2 = hidden_sizes
    ks = jax.random.split(key, 8)

    def lin(kw, kb, fan_in, fan_out):
        bound = 1.0 / np.sqrt(fan_in)
        w = jax.random.uniform(kw, (fan_in, fan_out), jnp.float32, -bound, bound)
        b = jax.random.uniform(kb, (1, fan_out), jnp.float32, -bound, bound)
        return w, b

    w1, b1 = lin(ks[0], ks[1], obs_dim, h1)
    w2, b2 = lin(ks[2], ks[3], h1, h2)
    wmu, bmu = lin(ks[4], ks[5], h2, act_dim)
    wm, bm = lin(ks[6], ks[7], h2, act_dim * act_dim)

    return dict(
        w1=w1, b1=b1, w2=w2, b2=b2, wmu=wmu, bmu=bmu, wm=wm, bm=bm,
        obs_lo=jnp.linspace(-2.0, -0.5, obs_dim, dtype=jnp.float32).reshape(1, obs_dim),
        obs_hi=jnp.linspace(0.5, 2.0, obs_dim, dtype=jnp.float32).reshape(1, obs_dim),
        act_lo=jnp.linspace(-2.0, -1.0, act_dim, dtype=jnp.float32).reshape(1, act_dim),
        act_hi=jnp.linspace(1.0, 2.0, act_dim, dtype=jnp.float32).reshape(1, act_dim),
    )


def prepare_params(raw):
    """One-time init transform (exact algebra):
       * fold RescaleInput (x' = x*scale + shift) into (w1, b1),
       * fuse the mu / m heads into a single (H, A + A*A) weight/bias."""
    span = raw["obs_hi"] - raw["obs_lo"]                       # (1, obs_dim)
    scale = UNIFORM_SIGMA / span
    shift = (-raw["obs_lo"] / span - 0.5) * UNIFORM_SIGMA
    w1 = raw["w1"] * scale.T                                   # (obs_dim, H1)
    b1 = raw["b1"] + shift @ raw["w1"]                         # (1, H1)
    wh = jnp.concatenate([raw["wmu"], raw["wm"]], axis=1)      # (H2, A + A*A)
    bh = jnp.concatenate([raw["bmu"], raw["bm"]], axis=1)
    return dict(w1=w1, b1=b1, w2=raw["w2"], b2=raw["b2"], wh=wh, bh=bh,
                act_lo=raw["act_lo"], act_hi=raw["act_hi"])


# ----------------------------------------------------------------------------
# Pure-JAX reference (original module math: MVN via Cholesky + tanh squash)
# ----------------------------------------------------------------------------
def reference_forward(p, obs, noise, deterministic=False, with_logprob=True):
    A = p["act_lo"].shape[-1]
    h = jnp.maximum(obs @ p["w1"] + p["b1"], 0.0)
    h = jnp.maximum(h @ p["w2"] + p["b2"], 0.0)
    y = h @ p["wh"] + p["bh"]
    mu = y[:, :A]
    m = y[:, A:].reshape(-1, A, A)
    cov = jnp.einsum("bki,bkj->bij", m, m) + MIN_COV_EIGEN * jnp.eye(A, dtype=jnp.float32)
    L = jnp.linalg.cholesky(cov)
    a = mu if deterministic else mu + jnp.einsum("bij,bj->bi", L, noise)
    if with_logprob:
        diff = (a - mu)[..., None]
        sol = jax.scipy.linalg.solve_triangular(L, diff, lower=True)[..., 0]
        maha = jnp.sum(sol * sol, axis=-1)
        half_log_det = jnp.sum(jnp.log(jnp.diagonal(L, axis1=-2, axis2=-1)), axis=-1)
        logp = -0.5 * (A * LOG_2PI + maha) - half_log_det
        logp = logp - jnp.sum(2.0 * (LOG_2 - a - jax.nn.softplus(-2.0 * a)), axis=1)
    else:
        logp = None
    t = jnp.tanh(a)
    action = p["act_lo"] + 0.5 * (t + 1.0) * (p["act_hi"] - p["act_lo"])
    return action, logp


# ----------------------------------------------------------------------------
# Driver
# ----------------------------------------------------------------------------
if __name__ == "__main__":
    B, OBS_DIM, ACT_DIM = 8, 16, 4
    HIDDEN = (32, 32)

    key = jax.random.PRNGKey(0)
    k_params, k_obs, k_noise = jax.random.split(key, 3)

    raw = init_params(k_params, OBS_DIM, HIDDEN, ACT_DIM)
    params = prepare_params(raw)

    u = jax.random.uniform(k_obs, (B, OBS_DIM), jnp.float32)
    obs = raw["obs_lo"] + u * (raw["obs_hi"] - raw["obs_lo"])       # within bounds
    noise = jax.random.normal(k_noise, (B, ACT_DIM), jnp.float32)   # rsample noise

    # --- verify the init-time RescaleInput fold in float64 (exact algebra) ---
    obs64 = np.asarray(obs, np.float64)
    lo64 = np.asarray(raw["obs_lo"], np.float64)
    hi64 = np.asarray(raw["obs_hi"], np.float64)
    x_resc = ((obs64 - lo64) / (hi64 - lo64) - 0.5) * UNIFORM_SIGMA
    pre_ref = x_resc @ np.asarray(raw["w1"], np.float64) + np.asarray(raw["b1"], np.float64)
    pre_fold = obs64 @ np.asarray(params["w1"], np.float64) + np.asarray(params["b1"], np.float64)
    np.testing.assert_allclose(pre_fold, pre_ref, rtol=1e-5, atol=1e-5)

    # --- kernel vs. pure-JAX reference (stochastic and deterministic paths) ---
    for det in (False, True):
        act_k, logp_k = squashed_gaussian_actor_forward(
            params, obs, noise, deterministic=det, with_logprob=True)
        act_k = jax.block_until_ready(act_k)
        logp_k = jax.block_until_ready(logp_k)
        act_r, logp_r = reference_forward(
            params, obs, noise, deterministic=det, with_logprob=True)

        assert act_k.shape == (B, ACT_DIM) and logp_k.shape == (B,)
        assert bool(jnp.all(jnp.isfinite(act_k))) and bool(jnp.all(jnp.isfinite(logp_k)))
        # Loose-ish tolerances: both sides may take different f32 matmul
        # precision paths on the MXU; real math bugs would be O(1) errors.
        np.testing.assert_allclose(np.asarray(act_k), np.asarray(act_r),
                                   rtol=2e-2, atol=2e-2)
        np.testing.assert_allclose(np.asarray(logp_k), np.asarray(logp_r),
                                   rtol=2e-2, atol=2e-1)

    # --- with_logprob=False path ---
    act_nl, logp_nl = squashed_gaussian_actor_forward(
        params, obs, noise, deterministic=False, with_logprob=False)
    act_nl = jax.block_until_ready(act_nl)
    assert logp_nl is None and act_nl.shape == (B, ACT_DIM)
    assert bool(jnp.all(jnp.isfinite(act_nl)))

    print("KERNEL_OK")
</pallas_src>

<mosaic_0001>
module attributes {stable_mosaic.version = 11 : i64} {
  func.func @_actor_fused_kernel(%arg0: memref<8x16xf32, #tpu.memory_space<vmem>>, %arg1: memref<16x32xf32, #tpu.memory_space<vmem>>, %arg2: memref<1x32xf32, #tpu.memory_space<vmem>>, %arg3: memref<32x32xf32, #tpu.memory_space<vmem>>, %arg4: memref<1x32xf32, #tpu.memory_space<vmem>>, %arg5: memref<32x20xf32, #tpu.memory_space<vmem>>, %arg6: memref<1x20xf32, #tpu.memory_space<vmem>>, %arg7: memref<1x4xf32, #tpu.memory_space<vmem>>, %arg8: memref<1x4xf32, #tpu.memory_space<vmem>>, %arg9: memref<8x4xf32, #tpu.memory_space<vmem>>, %arg10: memref<8x5xf32, #tpu.memory_space<vmem>>) attributes {dimension_semantics = [], scalar_prefetch = 0 : i64, scratch_operands = 0 : i64, tpu.core_type = #tpu.core_type<tc>} {
    %c0 = arith.constant 0 : index
    %c0_0 = arith.constant 0 : index
    %0 = vector.load %arg0[%c0, %c0_0] : memref<8x16xf32, #tpu.memory_space<vmem>>, vector<8x16xf32>
    %c0_1 = arith.constant 0 : index
    %c0_2 = arith.constant 0 : index
    %1 = vector.load %arg1[%c0_1, %c0_2] : memref<16x32xf32, #tpu.memory_space<vmem>>, vector<16x32xf32>
    %cst = arith.constant dense<0.000000e+00> : vector<8x32xf32>
    %2 = tpu.matmul %0, %1, %cst {dimension_numbers = #tpu.dot_dimension_numbers<[1], [0], [0], [1], [0, 0, 1, 1], [], []>} : vector<8x16xf32>, vector<16x32xf32>, vector<8x32xf32> -> vector<8x32xf32>
    %c0_3 = arith.constant 0 : index
    %c0_4 = arith.constant 0 : index
    %3 = vector.load %arg2[%c0_3, %c0_4] : memref<1x32xf32, #tpu.memory_space<vmem>>, vector<1x32xf32>
    %4 = vector.broadcast %3 : vector<1x32xf32> to vector<8x32xf32>
    %5 = arith.addf %2, %4 : vector<8x32xf32>
    %cst_5 = arith.constant 0.000000e+00 : f32
    %6 = vector.broadcast %cst_5 : f32 to vector<8x32xf32>
    %7 = arith.maximumf %5, %6 : vector<8x32xf32>
    %c0_6 = arith.constant 0 : index
    %c0_7 = arith.constant 0 : index
    %8 = vector.load %arg3[%c0_6, %c0_7] : memref<32x32xf32, #tpu.memory_space<vmem>>, vector<32x32xf32>
    %cst_8 = arith.constant dense<0.000000e+00> : vector<8x32xf32>
    %9 = tpu.matmul %7, %8, %cst_8 {dimension_numbers = #tpu.dot_dimension_numbers<[1], [0], [0], [1], [0, 0, 1, 1], [], []>} : vector<8x32xf32>, vector<32x32xf32>, vector<8x32xf32> -> vector<8x32xf32>
    %c0_9 = arith.constant 0 : index
    %c0_10 = arith.constant 0 : index
    %10 = vector.load %arg4[%c0_9, %c0_10] : memref<1x32xf32, #tpu.memory_space<vmem>>, vector<1x32xf32>
    %11 = vector.broadcast %10 : vector<1x32xf32> to vector<8x32xf32>
    %12 = arith.addf %9, %11 : vector<8x32xf32>
    %cst_11 = arith.constant 0.000000e+00 : f32
    %13 = vector.broadcast %cst_11 : f32 to vector<8x32xf32>
    %14 = arith.maximumf %12, %13 : vector<8x32xf32>
    %c0_12 = arith.constant 0 : index
    %c0_13 = arith.constant 0 : index
    %15 = vector.load %arg5[%c0_12, %c0_13] : memref<32x20xf32, #tpu.memory_space<vmem>>, vector<32x20xf32>
    %cst_14 = arith.constant dense<0.000000e+00> : vector<8x20xf32>
    %16 = tpu.matmul %14, %15, %cst_14 {dimension_numbers = #tpu.dot_dimension_numbers<[1], [0], [0], [1], [0, 0, 1, 1], [], []>} : vector<8x32xf32>, vector<32x20xf32>, vector<8x20xf32> -> vector<8x20xf32>
    %c0_15 = arith.constant 0 : index
    %c0_16 = arith.constant 0 : index
    %17 = vector.load %arg6[%c0_15, %c0_16] : memref<1x20xf32, #tpu.memory_space<vmem>>, vector<1x20xf32>
    %18 = vector.broadcast %17 : vector<1x20xf32> to vector<8x20xf32>
    %19 = arith.addf %16, %18 : vector<8x20xf32>
    %20 = vector.extract_strided_slice %19 {offsets = [0, 0], sizes = [8, 4], strides = [1, 1]} : vector<8x20xf32> to vector<8x4xf32>
    %21 = vector.extract_strided_slice %19 {offsets = [0, 4], sizes = [8, 1], strides = [1, 1]} : vector<8x20xf32> to vector<8x1xf32>
    %22 = vector.extract_strided_slice %19 {offsets = [0, 5], sizes = [8, 1], strides = [1, 1]} : vector<8x20xf32> to vector<8x1xf32>
    %23 = vector.extract_strided_slice %19 {offsets = [0, 6], sizes = [8, 1], strides = [1, 1]} : vector<8x20xf32> to vector<8x1xf32>
    %24 = vector.extract_strided_slice %19 {offsets = [0, 7], sizes = [8, 1], strides = [1, 1]} : vector<8x20xf32> to vector<8x1xf32>
    %25 = vector.extract_strided_slice %19 {offsets = [0, 8], sizes = [8, 1], strides = [1, 1]} : vector<8x20xf32> to vector<8x1xf32>
    %26 = vector.extract_strided_slice %19 {offsets = [0, 9], sizes = [8, 1], strides = [1, 1]} : vector<8x20xf32> to vector<8x1xf32>
    %27 = vector.extract_strided_slice %19 {offsets = [0, 10], sizes = [8, 1], strides = [1, 1]} : vector<8x20xf32> to vector<8x1xf32>
    %28 = vector.extract_strided_slice %19 {offsets = [0, 11], sizes = [8, 1], strides = [1, 1]} : vector<8x20xf32> to vector<8x1xf32>
    %29 = vector.extract_strided_slice %19 {offsets = [0, 12], sizes = [8, 1], strides = [1, 1]} : vector<8x20xf32> to vector<8x1xf32>
    %30 = vector.extract_strided_slice %19 {offsets = [0, 13], sizes = [8, 1], strides = [1, 1]} : vector<8x20xf32> to vector<8x1xf32>
    %31 = vector.extract_strided_slice %19 {offsets = [0, 14], sizes = [8, 1], strides = [1, 1]} : vector<8x20xf32> to vector<8x1xf32>
    %32 = vector.extract_strided_slice %19 {offsets = [0, 15], sizes = [8, 1], strides = [1, 1]} : vector<8x20xf32> to vector<8x1xf32>
    %33 = vector.extract_strided_slice %19 {offsets = [0, 16], sizes = [8, 1], strides = [1, 1]} : vector<8x20xf32> to vector<8x1xf32>
    %34 = vector.extract_strided_slice %19 {offsets = [0, 17], sizes = [8, 1], strides = [1, 1]} : vector<8x20xf32> to vector<8x1xf32>
    %35 = vector.extract_strided_slice %19 {offsets = [0, 18], sizes = [8, 1], strides = [1, 1]} : vector<8x20xf32> to vector<8x1xf32>
    %36 = vector.extract_strided_slice %19 {offsets = [0, 19], sizes = [8, 1], strides = [1, 1]} : vector<8x20xf32> to vector<8x1xf32>
    %c0_17 = arith.constant 0 : index
    %c0_18 = arith.constant 0 : index
    %37 = vector.load %arg9[%c0_17, %c0_18] : memref<8x4xf32, #tpu.memory_space<vmem>>, vector<8x1xf32>
    %c0_19 = arith.constant 0 : index
    %c1 = arith.constant 1 : index
    %38 = vector.load %arg9[%c0_19, %c1] : memref<8x4xf32, #tpu.memory_space<vmem>>, vector<8x1xf32>
    %c0_20 = arith.constant 0 : index
    %c2 = arith.constant 2 : index
    %39 = vector.load %arg9[%c0_20, %c2] : memref<8x4xf32, #tpu.memory_space<vmem>>, vector<8x1xf32>
    %c0_21 = arith.constant 0 : index
    %c3 = arith.constant 3 : index
    %40 = vector.load %arg9[%c0_21, %c3] : memref<8x4xf32, #tpu.memory_space<vmem>>, vector<8x1xf32>
    %41 = arith.mulf %21, %21 : vector<8x1xf32>
    %42 = arith.mulf %25, %25 : vector<8x1xf32>
    %43 = arith.addf %41, %42 : vector<8x1xf32>
    %44 = arith.mulf %29, %29 : vector<8x1xf32>
    %45 = arith.addf %43, %44 : vector<8x1xf32>
    %46 = arith.mulf %33, %33 : vector<8x1xf32>
    %47 = arith.addf %45, %46 : vector<8x1xf32>
    %cst_22 = arith.constant 9.99999993E-9 : f32
    %48 = vector.broadcast %cst_22 : f32 to vector<8x1xf32>
    %49 = arith.addf %47, %48 : vector<8x1xf32>
    %50 = math.sqrt %49 : vector<8x1xf32>
    %51 = arith.mulf %22, %21 : vector<8x1xf32>
    %52 = arith.mulf %26, %25 : vector<8x1xf32>
    %53 = arith.addf %51, %52 : vector<8x1xf32>
    %54 = arith.mulf %30, %29 : vector<8x1xf32>
    %55 = arith.addf %53, %54 : vector<8x1xf32>
    %56 = arith.mulf %34, %33 : vector<8x1xf32>
    %57 = arith.addf %55, %56 : vector<8x1xf32>
    %58 = arith.divf %57, %50 : vector<8x1xf32>
    %59 = arith.mulf %22, %22 : vector<8x1xf32>
    %60 = arith.mulf %26, %26 : vector<8x1xf32>
    %61 = arith.addf %59, %60 : vector<8x1xf32>
    %62 = arith.mulf %30, %30 : vector<8x1xf32>
    %63 = arith.addf %61, %62 : vector<8x1xf32>
    %64 = arith.mulf %34, %34 : vector<8x1xf32>
    %65 = arith.addf %63, %64 : vector<8x1xf32>
    %cst_23 = arith.constant 9.99999993E-9 : f32
    %66 = vector.broadcast %cst_23 : f32 to vector<8x1xf32>
    %67 = arith.addf %65, %66 : vector<8x1xf32>
    %68 = arith.mulf %58, %58 : vector<8x1xf32>
    %69 = arith.subf %67, %68 : vector<8x1xf32>
    %70 = math.sqrt %69 : vector<8x1xf32>
    %71 = arith.mulf %23, %21 : vector<8x1xf32>
    %72 = arith.mulf %27, %25 : vector<8x1xf32>
    %73 = arith.addf %71, %72 : vector<8x1xf32>
    %74 = arith.mulf %31, %29 : vector<8x1xf32>
    %75 = arith.addf %73, %74 : vector<8x1xf32>
    %76 = arith.mulf %35, %33 : vector<8x1xf32>
    %77 = arith.addf %75, %76 : vector<8x1xf32>
    %78 = arith.divf %77, %50 : vector<8x1xf32>
    %79 = arith.mulf %23, %22 : vector<8x1xf32>
    %80 = arith.mulf %27, %26 : vector<8x1xf32>
    %81 = arith.addf %79, %80 : vector<8x1xf32>
    %82 = arith.mulf %31, %30 : vector<8x1xf32>
    %83 = arith.addf %81, %82 : vector<8x1xf32>
    %84 = arith.mulf %35, %34 : vector<8x1xf32>
    %85 = arith.addf %83, %84 : vector<8x1xf32>
    %86 = arith.mulf %78, %58 : vector<8x1xf32>
    %87 = arith.subf %85, %86 : vector<8x1xf32>
    %88 = arith.divf %87, %70 : vector<8x1xf32>
    %89 = arith.mulf %23, %23 : vector<8x1xf32>
    %90 = arith.mulf %27, %27 : vector<8x1xf32>
    %91 = arith.addf %89, %90 : vector<8x1xf32>
    %92 = arith.mulf %31, %31 : vector<8x1xf32>
    %93 = arith.addf %91, %92 : vector<8x1xf32>
    %94 = arith.mulf %35, %35 : vector<8x1xf32>
    %95 = arith.addf %93, %94 : vector<8x1xf32>
    %cst_24 = arith.constant 9.99999993E-9 : f32
    %96 = vector.broadcast %cst_24 : f32 to vector<8x1xf32>
    %97 = arith.addf %95, %96 : vector<8x1xf32>
    %98 = arith.mulf %78, %78 : vector<8x1xf32>
    %99 = arith.subf %97, %98 : vector<8x1xf32>
    %100 = arith.mulf %88, %88 : vector<8x1xf32>
    %101 = arith.subf %99, %100 : vector<8x1xf32>
    %102 = math.sqrt %101 : vector<8x1xf32>
    %103 = arith.mulf %24, %21 : vector<8x1xf32>
    %104 = arith.mulf %28, %25 : vector<8x1xf32>
    %105 = arith.addf %103, %104 : vector<8x1xf32>
    %106 = arith.mulf %32, %29 : vector<8x1xf32>
    %107 = arith.addf %105, %106 : vector<8x1xf32>
    %108 = arith.mulf %36, %33 : vector<8x1xf32>
    %109 = arith.addf %107, %108 : vector<8x1xf32>
    %110 = arith.divf %109, %50 : vector<8x1xf32>
    %111 = arith.mulf %24, %22 : vector<8x1xf32>
    %112 = arith.mulf %28, %26 : vector<8x1xf32>
    %113 = arith.addf %111, %112 : vector<8x1xf32>
    %114 = arith.mulf %32, %30 : vector<8x1xf32>
    %115 = arith.addf %113, %114 : vector<8x1xf32>
    %116 = arith.mulf %36, %34 : vector<8x1xf32>
    %117 = arith.addf %115, %116 : vector<8x1xf32>
    %118 = arith.mulf %110, %58 : vector<8x1xf32>
    %119 = arith.subf %117, %118 : vector<8x1xf32>
    %120 = arith.divf %119, %70 : vector<8x1xf32>
    %121 = arith.mulf %24, %23 : vector<8x1xf32>
    %122 = arith.mulf %28, %27 : vector<8x1xf32>
    %123 = arith.addf %121, %122 : vector<8x1xf32>
    %124 = arith.mulf %32, %31 : vector<8x1xf32>
    %125 = arith.addf %123, %124 : vector<8x1xf32>
    %126 = arith.mulf %36, %35 : vector<8x1xf32>
    %127 = arith.addf %125, %126 : vector<8x1xf32>
    %128 = arith.mulf %110, %78 : vector<8x1xf32>
    %129 = arith.subf %127, %128 : vector<8x1xf32>
    %130 = arith.mulf %120, %88 : vector<8x1xf32>
    %131 = arith.subf %129, %130 : vector<8x1xf32>
    %132 = arith.divf %131, %102 : vector<8x1xf32>
    %133 = arith.mulf %24, %24 : vector<8x1xf32>
    %134 = arith.mulf %28, %28 : vector<8x1xf32>
    %135 = arith.addf %133, %134 : vector<8x1xf32>
    %136 = arith.mulf %32, %32 : vector<8x1xf32>
    %137 = arith.addf %135, %136 : vector<8x1xf32>
    %138 = arith.mulf %36, %36 : vector<8x1xf32>
    %139 = arith.addf %137, %138 : vector<8x1xf32>
    %cst_25 = arith.constant 9.99999993E-9 : f32
    %140 = vector.broadcast %cst_25 : f32 to vector<8x1xf32>
    %141 = arith.addf %139, %140 : vector<8x1xf32>
    %142 = arith.mulf %110, %110 : vector<8x1xf32>
    %143 = arith.subf %141, %142 : vector<8x1xf32>
    %144 = arith.mulf %120, %120 : vector<8x1xf32>
    %145 = arith.subf %143, %144 : vector<8x1xf32>
    %146 = arith.mulf %132, %132 : vector<8x1xf32>
    %147 = arith.subf %145, %146 : vector<8x1xf32>
    %148 = math.sqrt %147 : vector<8x1xf32>
    %149 = arith.mulf %50, %37 : vector<8x1xf32>
    %150 = arith.mulf %58, %37 : vector<8x1xf32>
    %151 = arith.mulf %70, %38 : vector<8x1xf32>
    %152 = arith.addf %150, %151 : vector<8x1xf32>
    %153 = arith.mulf %78, %37 : vector<8x1xf32>
    %154 = arith.mulf %88, %38 : vector<8x1xf32>
    %155 = arith.addf %153, %154 : vector<8x1xf32>
    %156 = arith.mulf %102, %39 : vector<8x1xf32>
    %157 = arith.addf %155, %156 : vector<8x1xf32>
    %158 = arith.mulf %110, %37 : vector<8x1xf32>
    %159 = arith.mulf %120, %38 : vector<8x1xf32>
    %160 = arith.addf %158, %159 : vector<8x1xf32>
    %161 = arith.mulf %132, %39 : vector<8x1xf32>
    %162 = arith.addf %160, %161 : vector<8x1xf32>
    %163 = arith.mulf %148, %40 : vector<8x1xf32>
    %164 = arith.addf %162, %163 : vector<8x1xf32>
    %165 = tpu.iota {dimensions = array<i32: 1>} : vector<1x4xi32>
    %c0_i32 = arith.constant 0 : i32
    %166 = vector.broadcast %c0_i32 : i32 to vector<1x4xi32>
    %167 = arith.cmpi eq, %165, %166 : vector<1x4xi32>
    %cst_26 = arith.constant 0.000000e+00 : f32
    %168 = vector.shape_cast %167 : vector<1x4xi1> to vector<1x4xi1>
    %169 = vector.broadcast %168 : vector<1x4xi1> to vector<8x4xi1>
    %170 = vector.shape_cast %149 : vector<8x1xf32> to vector<8x1xf32>
    %171 = vector.broadcast %170 : vector<8x1xf32> to vector<8x4xf32>
    %172 = vector.broadcast %cst_26 : f32 to vector<8x4xf32>
    %173 = arith.select %169, %171, %172 : vector<8x4xi1>, vector<8x4xf32>
    %174 = arith.addf %20, %173 : vector<8x4xf32>
    %c1_i32 = arith.constant 1 : i32
    %175 = vector.broadcast %c1_i32 : i32 to vector<1x4xi32>
    %176 = arith.cmpi eq, %165, %175 : vector<1x4xi32>
    %cst_27 = arith.constant 0.000000e+00 : f32
    %177 = vector.shape_cast %176 : vector<1x4xi1> to vector<1x4xi1>
    %178 = vector.broadcast %177 : vector<1x4xi1> to vector<8x4xi1>
    %179 = vector.shape_cast %152 : vector<8x1xf32> to vector<8x1xf32>
    %180 = vector.broadcast %179 : vector<8x1xf32> to vector<8x4xf32>
    %181 = vector.broadcast %cst_27 : f32 to vector<8x4xf32>
    %182 = arith.select %178, %180, %181 : vector<8x4xi1>, vector<8x4xf32>
    %183 = arith.addf %174, %182 : vector<8x4xf32>
    %c2_i32 = arith.constant 2 : i32
    %184 = vector.broadcast %c2_i32 : i32 to vector<1x4xi32>
    %185 = arith.cmpi eq, %165, %184 : vector<1x4xi32>
    %cst_28 = arith.constant 0.000000e+00 : f32
    %186 = vector.shape_cast %185 : vector<1x4xi1> to vector<1x4xi1>
    %187 = vector.broadcast %186 : vector<1x4xi1> to vector<8x4xi1>
    %188 = vector.shape_cast %157 : vector<8x1xf32> to vector<8x1xf32>
    %189 = vector.broadcast %188 : vector<8x1xf32> to vector<8x4xf32>
    %190 = vector.broadcast %cst_28 : f32 to vector<8x4xf32>
    %191 = arith.select %187, %189, %190 : vector<8x4xi1>, vector<8x4xf32>
    %192 = arith.addf %183, %191 : vector<8x4xf32>
    %c3_i32 = arith.constant 3 : i32
    %193 = vector.broadcast %c3_i32 : i32 to vector<1x4xi32>
    %194 = arith.cmpi eq, %165, %193 : vector<1x4xi32>
    %cst_29 = arith.constant 0.000000e+00 : f32
    %195 = vector.shape_cast %194 : vector<1x4xi1> to vector<1x4xi1>
    %196 = vector.broadcast %195 : vector<1x4xi1> to vector<8x4xi1>
    %197 = vector.shape_cast %164 : vector<8x1xf32> to vector<8x1xf32>
    %198 = vector.broadcast %197 : vector<8x1xf32> to vector<8x4xf32>
    %199 = vector.broadcast %cst_29 : f32 to vector<8x4xf32>
    %200 = arith.select %196, %198, %199 : vector<8x4xi1>, vector<8x4xf32>
    %201 = arith.addf %192, %200 : vector<8x4xf32>
    %202 = arith.divf %149, %50 : vector<8x1xf32>
    %203 = arith.mulf %58, %202 : vector<8x1xf32>
    %204 = arith.subf %152, %203 : vector<8x1xf32>
    %205 = arith.divf %204, %70 : vector<8x1xf32>
    %206 = arith.mulf %78, %202 : vector<8x1xf32>
    %207 = arith.subf %157, %206 : vector<8x1xf32>
    %208 = arith.mulf %88, %205 : vector<8x1xf32>
    %209 = arith.subf %207, %208 : vector<8x1xf32>
    %210 = arith.divf %209, %102 : vector<8x1xf32>
    %211 = arith.mulf %110, %202 : vector<8x1xf32>
    %212 = arith.subf %164, %211 : vector<8x1xf32>
    %213 = arith.mulf %120, %205 : vector<8x1xf32>
    %214 = arith.subf %212, %213 : vector<8x1xf32>
    %215 = arith.mulf %132, %210 : vector<8x1xf32>
    %216 = arith.subf %214, %215 : vector<8x1xf32>
    %217 = arith.divf %216, %148 : vector<8x1xf32>
    %218 = arith.mulf %202, %202 : vector<8x1xf32>
    %219 = arith.mulf %205, %205 : vector<8x1xf32>
    %220 = arith.addf %218, %219 : vector<8x1xf32>
    %221 = arith.mulf %210, %210 : vector<8x1xf32>
    %222 = arith.addf %220, %221 : vector<8x1xf32>
    %223 = arith.mulf %217, %217 : vector<8x1xf32>
    %224 = arith.addf %222, %223 : vector<8x1xf32>
    %225 = math.log %50 : vector<8x1xf32>
    %226 = math.log %70 : vector<8x1xf32>
    %227 = arith.addf %225, %226 : vector<8x1xf32>
    %228 = math.log %102 : vector<8x1xf32>
    %229 = arith.addf %227, %228 : vector<8x1xf32>
    %230 = math.log %148 : vector<8x1xf32>
    %231 = arith.addf %229, %230 : vector<8x1xf32>
    %cst_30 = arith.constant 7.35150814 : f32
    %232 = vector.broadcast %cst_30 : f32 to vector<8x1xf32>
    %233 = arith.addf %232, %224 : vector<8x1xf32>
    %cst_31 = arith.constant -5.000000e-01 : f32
    %234 = vector.broadcast %cst_31 : f32 to vector<8x1xf32>
    %235 = arith.mulf %234, %233 : vector<8x1xf32>
    %236 = arith.subf %235, %231 : vector<8x1xf32>
    %cst_32 = arith.constant -2.000000e+00 : f32
    %237 = vector.broadcast %cst_32 : f32 to vector<8x4xf32>
    %238 = arith.mulf %237, %201 : vector<8x4xf32>
    %cst_33 = arith.constant 0.000000e+00 : f32
    %239 = vector.broadcast %cst_33 : f32 to vector<8x4xf32>
    %240 = arith.maximumf %238, %239 : vector<8x4xf32>
    %241 = math.absf %238 : vector<8x4xf32>
    %cst_34 = arith.constant 0.000000e+00 : f32
    %242 = vector.broadcast %cst_34 : f32 to vector<8x4xf32>
    %243 = arith.subf %242, %241 : vector<8x4xf32>
    %244 = math.exp %243 : vector<8x4xf32>
    %cst_35 = arith.constant 1.000000e+00 : f32
    %245 = vector.broadcast %cst_35 : f32 to vector<8x4xf32>
    %246 = arith.addf %245, %244 : vector<8x4xf32>
    %247 = math.log %246 : vector<8x4xf32>
    %248 = arith.addf %240, %247 : vector<8x4xf32>
    %cst_36 = arith.constant 0.693147182 : f32
    %249 = vector.broadcast %cst_36 : f32 to vector<8x4xf32>
    %250 = arith.subf %249, %201 : vector<8x4xf32>
    %251 = arith.subf %250, %248 : vector<8x4xf32>
    %cst_37 = arith.constant 2.000000e+00 : f32
    %252 = vector.broadcast %cst_37 : f32 to vector<8x4xf32>
    %253 = arith.mulf %252, %251 : vector<8x4xf32>
    %cst_38 = arith.constant dense<0.000000e+00> : vector<8xf32>
    %254 = vector.multi_reduction <add>, %253, %cst_38 [1] : vector<8x4xf32> to vector<8xf32>
    %255 = vector.shape_cast %254 : vector<8xf32> to vector<8x1xf32>
    %256 = arith.subf %236, %255 : vector<8x1xf32>
    %257 = math.tanh %201 : vector<8x4xf32>
    %c0_39 = arith.constant 0 : index
    %c0_40 = arith.constant 0 : index
    %258 = vector.load %arg7[%c0_39, %c0_40] : memref<1x4xf32, #tpu.memory_space<vmem>>, vector<1x4xf32>
    %cst_41 = arith.constant 1.000000e+00 : f32
    %259 = vector.broadcast %cst_41 : f32 to vector<8x4xf32>
    %260 = arith.addf %257, %259 : vector<8x4xf32>
    %cst_42 = arith.constant 5.000000e-01 : f32
    %261 = vector.broadcast %cst_42 : f32 to vector<8x4xf32>
    %262 = arith.mulf %261, %260 : vector<8x4xf32>
    %c0_43 = arith.constant 0 : index
    %c0_44 = arith.constant 0 : index
    %263 = vector.load %arg8[%c0_43, %c0_44] : memref<1x4xf32, #tpu.memory_space<vmem>>, vector<1x4xf32>
    %c0_45 = arith.constant 0 : index
    %c0_46 = arith.constant 0 : index
    %264 = vector.load %arg7[%c0_45, %c0_46] : memref<1x4xf32, #tpu.memory_space<vmem>>, vector<1x4xf32>
    %265 = arith.subf %263, %264 : vector<1x4xf32>
    %266 = vector.broadcast %265 : vector<1x4xf32> to vector<8x4xf32>
    %267 = arith.mulf %262, %266 : vector<8x4xf32>
    %268 = vector.broadcast %258 : vector<1x4xf32> to vector<8x4xf32>
    %269 = arith.addf %268, %267 : vector<8x4xf32>
    %c0_47 = arith.constant 0 : index
    %c0_48 = arith.constant 0 : index
    %270 = vector.load %arg10[%c0_47, %c0_48] : memref<8x5xf32, #tpu.memory_space<vmem>>, vector<8x4xf32>
    tpu.vector_store %arg10[%c0_47, %c0_48], %269 {strides = array<i32>} : memref<8x5xf32, #tpu.memory_space<vmem>>, vector<8x4xf32>,
    %c0_49 = arith.constant 0 : index
    %c4 = arith.constant 4 : index
    %271 = vector.load %arg10[%c0_49, %c4] : memref<8x5xf32, #tpu.memory_space<vmem>>, vector<8x1xf32>
    tpu.vector_store %arg10[%c0_49, %c4], %256 {strides = array<i32>} : memref<8x5xf32, #tpu.memory_space<vmem>>, vector<8x1xf32>,
    return
  }
}

</mosaic_0001>

<bundles_post_ra>
// kernel: _forward_impl.1
= control target key start
LH: loop header
LB: loop body
LE: loop exit
PB: predicated region body
PF: predicated region fallthrough
CT: control target
= control target key end

     0   :  { %vm42_vm0 = vcmask 130048   ;;  %vm75_vm1 = vcmask 261120   ;;  %s713_s17 = smov 124   ;;  %s715_s18 = smov 120   ;;  %s1039_s1 = inlined_call_operand.vmem [shape: f32[16,32], index: 1, kind: input, shape index: {}]   ;;  %s1040_s0 = inlined_call_operand.vmem [shape: f32[8,16], index: 0, kind: input, shape index: {}]   ;;  %s1041_s3 = inlined_call_operand.vmem [shape: f32[32,32], index: 3, kind: input, shape index: {}]   ;;  %s1042_s2 = inlined_call_operand.vmem [shape: f32[1,32], index: 2, kind: input, shape index: {}]   ;;  %s1043_s4 = inlined_call_operand.vmem [shape: f32[1,32], index: 4, kind: input, shape index: {}]   ;;  %s1044_s5 = inlined_call_operand.vmem [shape: f32[32,20], index: 5, kind: input, shape index: {}]   ;;  %s1045_s6 = inlined_call_operand.vmem [shape: f32[1,20], index: 6, kind: input, shape index: {}]   ;;  %s1046_s9 = inlined_call_operand.vmem [shape: f32[8,4], index: 9, kind: input, shape index: {}]   ;;  %s1047_s7 = inlined_call_operand.vmem [shape: f32[1,4], index: 7, kind: input, shape index: {}]   ;;  %s1048_s8 = inlined_call_operand.vmem [shape: f32[1,4], index: 8, kind: input, shape index: {}]   ;;  %s1049_s10 = inlined_call_operand.vmem [shape: f32[8,5], index: 10, kind: output, shape index: {}]  }
   0x1   :  { %v37_v0 = vld [vmem:[%s1039_s1 + $0x8] sm:$0xff]  ;;  %v36_v1 = vld [vmem:[%s1039_s1] sm:$0xff]  ;;  %v70_v3 = vld [vmem:[%s1041_s3 + $0x18] sm:$0xff]  ;;  %s717_s19 = smov 3   ;;  %s718_s22 = smov 4  }
   0x2   :  { %60 = vmatpush.msra.mxu0 %v37_v0  ;;  %v35_v2 = vld [vmem:[%s1040_s0] sm:$0xff]  ;;  %91 = vmatpush.msra.mxu1 %v70_v3  ;;  %v69_v4 = vld [vmem:[%s1041_s3 + $0x10] sm:$0xff]  ;;  %v68_v5 = vld [vmem:[%s1041_s3 + $0x8] sm:$0xff]  ;;  %s721_s23 = smov 5   ;;  %s722_s1 = smov 7  }
   0x3   :  { %v67_v6 = vld [vmem:[%s1041_s3] sm:$0xff]  ;;  %v103_v7 = vld [vmem:[%s1044_s5 + $0x18] sm:$0xff]  ;;  %v102_v12 = vld [vmem:[%s1044_s5 + $0x10] sm:$0xff]  ;;  %s726_s24 = smov 127   ;;  %s727_s0 = smov 126  }
   0x4   :  { %61 = vmatpush.msra.mxu0 %v36_v1  ;;  %92 = vmatpush.msra.mxu1 %v69_v4  ;;  %v666_v8 = vld [vmem:[%s1042_s2] ss:$0 sm:$0xff]  ;;  %v101_v13 = vld [vmem:[%s1044_s5 + $0x8] sm:$0xff] }
   0x5   :  { %641 = vmatmul.msk.f32.vlgmr.msra.gmra.mxu0 %vm42_vm0, %v35_v2  ;;  %123 = vmatpush.msra.mxu2 %v103_v7  ;;  %v100_v14 = vld [vmem:[%s1044_s5] sm:$0xff]  ;;  %s712_s5 = smov 116  }
   0x6   :  { %93 = vmatpush.msra.mxu1 %v68_v5  ;;  %v667_v15 = vld [vmem:[%s1043_s4] ss:$0 sm:$0xff]  ;;  %s714_s4 = smov 1  }
   0x7   :  { %124 = vmatpush.msra.mxu2 %v102_v12  ;;  %v668_v19 = vld [vmem:[%s1045_s6] ss:$0 sm:$0xff]  ;;  %s716_s6 = smov 2  }
   0x8   :  { %94 = vmatpush.msra.mxu1 %v67_v6 }
   0x9   :  { %125 = vmatpush.msra.mxu2 %v101_v13 }
   0xb   :  { %126 = vmatpush.msra.mxu2 %v100_v14 }
  0x82   :  { %v63_v9 = vpop.f32.mrf.mxu0 }
  0x83   :  { %v64_v10 = vadd.f32 %v666_v8, %v63_v9 }
  0x85   :  { %v66_v11 = vmax.f32 %v64_v10, 0.0  ;;  %v883_v10 = vld [vmem:[%s1046_s9] sm:$0xff]  ;;  %s719_s9 = smov 6  }
  0x87   :  { %642 = vmatmul.msk.f32.vlgmr.msra.gmra.mxu1 %vm75_vm1, %v66_v11 }
 0x104   :  { %v96_v16 = vpop.f32.mrf.mxu1 }
 0x105   :  { %v97_v17 = vadd.f32 %v667_v15, %v96_v16 }
 0x107   :  { %v99_v18 = vmax.f32 %v97_v17, 0.0 }
 0x109   :  { %643 = vmatmul.msk.f32.vlgmr.msra.gmra.mxu2 %vm75_vm1, %v99_v18 }
 0x18c   :  { %v128_v20 = vpop.f32.mrf.mxu2 }
 0x18d   :  { %v826_v21 = vadd.f32 %v668_v19, %v128_v20 }
 0x18f   :  { %v132_v22 = vmul.f32 %v826_v21, %v826_v21 }
 0x191   :  { %142 = vrot.lane.b32.xlu1 %v132_v22, %s712_s5  ;;  %134 = vrot.lane.b32.xlu0 %v132_v22, %s713_s17 }
 0x199   :  { %160 = vrot.lane.b32.xlu1 %v826_v21, %s714_s4  ;;  %138 = vrot.lane.b32.xlu0 %v132_v22, %s715_s18 }
 0x203   :  { %v143_v23 = vpop.permute.xlu1 %142  ;;  %v135_v24 = vpop.permute.xlu0 %134 }
 0x204   :  { %v137_v25 = vadd.f32 %v135_v24, %v132_v22 }
 0x20b   :  { %v161_v26 = vpop.permute.xlu1 %160  ;;  %v139_v27 = vpop.permute.xlu0 %138 }
 0x20c   :  { %v163_v28 = vmul.f32 %v161_v26, %v826_v21  ;;  %v141_v29 = vadd.f32 %v139_v27, %v137_v25 }
 0x20e   :  { %v145_v30 = vadd.f32 %v143_v23, %v141_v29  ;;  %173 = vrot.lane.b32.xlu1 %v163_v28, %s712_s5  ;;  %169 = vrot.lane.b32.xlu0 %v163_v28, %s715_s18 }
 0x210   :  { %v838_v31 = vadd.f32 1e-08, %v145_v30 }
 0x212   :  { %670 = vrsqrt.f32 %v838_v31  ;;  %vm154_vm2 = vcmp.eq.f32.partialorder %v838_v31, inf  ;;  %v157_v39 = vand.u32 2147483648, %v838_v31  ;;  %vm156_vm3 = vcmp.eq.f32.partialorder %v838_v31, 0.0 }
 0x218   :  { %v671_v32 = vpop.eup %670 }
 0x219   :  { %v148_v33 = vmul.f32 %v671_v32, %v838_v31 }
 0x21b   :  { %v149_v34 = vmul.f32 %v671_v32, %v148_v33 }
 0x21d   :  { %v150_v35 = vmul.f32 0.5, %v149_v34 }
 0x21f   :  { %v151_v36 = vsub.f32 1.5, %v150_v35 }
 0x221   :  { %v152_v37 = vmul.f32 %v671_v32, %v151_v36 }
 0x223   :  { %v153_v38 = vmul.f32 %v152_v37, %v838_v31 }
 0x225   :  { %v155_v40 = vsel %vm154_vm2, %v838_v31, %v153_v38 }
 0x226   :  { %v847_v41 = vsel %vm156_vm3, %v157_v39, %v155_v40 }
 0x227   :  { %227 = vrot.lane.b32.xlu0 %v847_v41, %s716_s6  ;;  %178 = vrot.lane.b32.xlu2 %v847_v41, %s714_s4  ;;  %vm469_vm0 = vweird.f32 %v847_v41 }
 0x22f   :  { %165 = vrot.lane.b32.xlu2 %v163_v28, %s713_s17 }
 0x237   :  { %210 = vrot.lane.b32.xlu2 %v826_v21, %s716_s6 }
 0x280   :  { %v170_v48 = vpop.permute.xlu0 %169  ;;  %v174_v54 = vpop.permute.xlu1 %173 }
 0x281   :  { %v179_v42 = vpop.permute.xlu2 %178 }
 0x282   :  { %672 = vrcp.f32 %v179_v42  ;;  %v192_v49 = vand.u32 2147483648, %v179_v42  ;;  %v190_v51 = vand.u32 2147483647, %v179_v42  ;;  %vm186_vm5 = vweird.f32 %v179_v42 }
 0x284   :  { %v193_v55 = vor.u32 1.1754944e-38, %v192_v49  ;;  %vm191_vm7 = vcmp.eq.f32.partialorder %v190_v51, 8.507059e+37  ;;  %v473_v49 = vand.u32 2147483647, %v847_v41 }
 0x288   :  { %v673_v43 = vpop.eup %672 }
 0x289   :  { %v182_v44 = vmul.f32 %v673_v43, %v179_v42  ;;  %v166_v45 = vpop.permute.xlu2 %165  ;;  %vm187_vm4 = vweird.f32 %v673_v43 }
 0x28a   :  { %v168_v46 = vadd.f32 %v166_v45, %v163_v28  ;;  %vm188_vm6 = vmor %vm186_vm5, %vm187_vm4  ;;  %vm474_vm5 = vcmp.eq.f32.partialorder %v473_v49, 8.507059e+37 }
 0x28b   :  { %v183_v47 = vsub.f32 1.0, %v182_v44 }
 0x28c   :  { %v172_v52 = vadd.f32 %v170_v48, %v168_v46 }
 0x28d   :  { %v184_v50 = vmul.f32 %v673_v43, %v183_v47  ;;  %v475_v47 = vand.u32 2147483648, %v847_v41 }
 0x28e   :  { %v856_v57 = vadd.f32 %v174_v54, %v172_v52 }
 0x28f   :  { %v185_v53 = vadd.f32 %v673_v43, %v184_v50 }
 0x291   :  { %v189_v56 = vsel %vm188_vm6, %v673_v43, %v185_v53  ;;  %v211_v58 = vpop.permute.xlu2 %210 }
 0x292   :  { %v194_v59 = vsel %vm191_vm7, %v193_v55, %v189_v56  ;;  %v213_v60 = vmul.f32 %v211_v58, %v826_v21  ;;  %v476_v58 = vor.u32 1.1754944e-38, %v475_v47 }
 0x293   :  { %v860_v61 = vmul.f32 %v194_v59, %v856_v57 }
 0x294   :  { %219 = vrot.lane.b32.xlu0 %v213_v60, %s715_s18  ;;  %215 = vrot.lane.b32.xlu2 %v213_v60, %s713_s17 }
 0x295   :  { %v196_v62 = vmul.f32 %v860_v61, %v860_v61 }
 0x297   :  { %v197_v63 = vsub.f32 %v838_v31, %v196_v62 }
 0x299   :  { %674 = vrsqrt.f32 %v197_v63  ;;  %vm205_vm8 = vcmp.eq.f32.partialorder %v197_v63, inf  ;;  %v208_v7 = vand.u32 2147483648, %v197_v63  ;;  %vm207_vm9 = vcmp.eq.f32.partialorder %v197_v63, 0.0  ;;  %v228_v11 = vpop.permute.xlu0 %227 }
 0x29a   :  { %676 = vrcp.f32 %v228_v11  ;;  %v241_v26 = vand.u32 2147483648, %v228_v11  ;;  %vm235_vm11 = vweird.f32 %v228_v11  ;;  %v239_v28 = vand.u32 2147483647, %v228_v11 }
 0x29b   :  { %678 = vrcp.f32 %v847_v41 }
 0x29c   :  { %286 = vrot.lane.b32.xlu0 %v826_v21, %s717_s19  ;;  %246 = vrot.lane.b32.xlu2 %v860_v61, %s714_s4  ;;  %v242_v36 = vor.u32 1.1754944e-38, %v241_v26  ;;  %vm240_vm13 = vcmp.eq.f32.partialorder %v239_v28, 8.507059e+37 }
 0x29f   :  { %v675_v0 = vpop.eup %674 }
 0x2a0   :  { %v199_v1 = vmul.f32 %v675_v0, %v197_v63  ;;  %v677_v15 = vpop.eup %676 }
 0x2a1   :  { %v231_v16 = vmul.f32 %v677_v15, %v228_v11  ;;  %v679_v18 = vpop.eup %678  ;;  %vm236_vm10 = vweird.f32 %v677_v15  ;;  %v720_v11 = vmov 4  }
 0x2a2   :  { %v200_v2 = vmul.f32 %v675_v0, %v199_v1  ;;  %v465_v20 = vmul.f32 %v679_v18, %v847_v41  ;;  %vm237_vm12 = vmor %vm235_vm11, %vm236_vm10  ;;  %vm470_vm14 = vweird.f32 %v679_v18  ;;  %661 = vset.pattern.permute.xlu2 %v720_v11 }
 0x2a3   :  { %v232_v17 = vsub.f32 1.0, %v231_v16  ;;  %vm471_vm2 = vmor %vm469_vm0, %vm470_vm14 }
 0x2a4   :  { %303 = vrot.lane.b32.xlu2 %v847_v41, %s717_s19  ;;  %v201_v3 = vmul.f32 0.5, %v200_v2  ;;  %v466_v25 = vsub.f32 1.0, %v465_v20 }
 0x2a5   :  { %v233_v19 = vmul.f32 %v677_v15, %v232_v17 }
 0x2a6   :  { %v202_v4 = vsub.f32 1.5, %v201_v3  ;;  %v467_v33 = vmul.f32 %v679_v18, %v466_v25 }
 0x2a7   :  { %v234_v24 = vadd.f32 %v677_v15, %v233_v19 }
 0x2a8   :  { %v203_v5 = vmul.f32 %v675_v0, %v202_v4  ;;  %v468_v43 = vadd.f32 %v679_v18, %v467_v33 }
 0x2a9   :  { %v238_v32 = vsel %vm237_vm12, %v677_v15, %v234_v24 }
 0x2aa   :  { %v204_v6 = vmul.f32 %v203_v5, %v197_v63  ;;  %v243_v39 = vsel %vm240_vm13, %v242_v36, %v238_v32  ;;  %v472_v53 = vsel %vm471_vm2, %v679_v18, %v468_v43  ;;  %v724_v32 = vmov 6  }
 0x2ab   :  { %663 = vset.pattern.permute.xlu1 %v724_v32 }
 0x2ac   :  { %v206_v8 = vsel %vm205_vm8, %v197_v63, %v204_v6  ;;  %v477_v63 = vsel %vm474_vm5, %v476_v58, %v472_v53 }
 0x2ad   :  { %v873_v9 = vsel %vm207_vm9, %v208_v7, %v206_v8 }
 0x2ae   :  { %326 = vrot.lane.b32.xlu0 %v873_v9, %s716_s6  ;;  %252 = vrot.lane.b32.xlu1 %v873_v9, %s714_s4 }
 0x2b6   :  { %223 = vrot.lane.b32.xlu1 %v213_v60, %s712_s5 }
 0x2be   :  { %394 = vrot.lane.b32.xlu1 %v883_v10, %s718_s22 }
 0x2ee   :  { %v216_v23 = vpop.permute.xlu2 %215 }
 0x2ef   :  { %v218_v27 = vadd.f32 %v216_v23, %v213_v60  ;;  %v723_v23 = vmov 5  }
 0x2f0   :  { %662 = vset.pattern.permute.xlu0 %v723_v23 }
 0x2f6   :  { %v247_v44 = vpop.permute.xlu2 %246 }
 0x2fe   :  { %v304_v18 = vpop.permute.xlu2 %303 }
 0x2ff   :  { %vm311_vm9 = vweird.f32 %v304_v18  ;;  %v315_v43 = vand.u32 2147483647, %v304_v18 }
 0x301   :  { %vm316_vm12 = vcmp.eq.f32.partialorder %v315_v43, 8.507059e+37 }
 0x306   :  { %v220_v12 = vpop.permute.xlu0 %219 }
 0x307   :  { %v222_v30 = vadd.f32 %v220_v12, %v218_v27 }
 0x30e   :  { %v287_v13 = vpop.permute.xlu0 %286 }
 0x30f   :  { %v887_v14 = vmul.f32 %v287_v13, %v826_v21 }
 0x311   :  { %295 = vrot.lane.b32.xlu0 %v887_v14, %s715_s18  ;;  %291 = vrot.lane.b32.xlu1 %v887_v14, %s713_s17 }
 0x319   :  { %299 = vrot.lane.b32.xlu1 %v887_v14, %s712_s5 }
 0x320   :  { %v253_v22 = vpop.permute.xlu1 %252  ;;  %v327_v19 = vpop.permute.xlu0 %326 }
 0x321   :  { %680 = vrcp.f32 %v253_v22  ;;  %v266_v40 = vand.u32 2147483648, %v253_v22  ;;  %v264_v46 = vand.u32 2147483647, %v253_v22  ;;  %vm260_vm1 = vweird.f32 %v253_v22 }
 0x322   :  { %vm334_vm13 = vweird.f32 %v327_v19 }
 0x323   :  { %v267_v51 = vor.u32 1.1754944e-38, %v266_v40  ;;  %vm265_vm4 = vcmp.eq.f32.partialorder %v264_v46, 8.507059e+37 }
 0x327   :  { %v681_v29 = vpop.eup %680 }
 0x328   :  { %v256_v34 = vmul.f32 %v681_v29, %v253_v22  ;;  %v224_v35 = vpop.permute.xlu1 %223  ;;  %vm261_vm15 = vweird.f32 %v681_v29 }
 0x329   :  { %v897_v37 = vadd.f32 %v224_v35, %v222_v30  ;;  %vm262_vm3 = vmor %vm260_vm1, %vm261_vm15  ;;  %v317_v35 = vand.u32 2147483648, %v304_v18  ;;  %vm490_vm1 = vweird.f32 %v873_v9 }
 0x32a   :  { %v257_v38 = vsub.f32 1.0, %v256_v34 }
 0x32b   :  { %v900_v42 = vmul.f32 %v243_v39, %v897_v37  ;;  %v318_v46 = vor.u32 1.1754944e-38, %v317_v35 }
 0x32c   :  { %v258_v45 = vmul.f32 %v681_v29, %v257_v38 }
 0x32d   :  { %v249_v48 = vmul.f32 %v247_v44, %v900_v42  ;;  %345 = vrot.lane.b32.xlu0 %v900_v42, %s714_s4  ;;  %v270_v55 = vmul.f32 %v900_v42, %v900_v42 }
 0x32e   :  { %v259_v50 = vadd.f32 %v681_v29, %v258_v45 }
 0x32f   :  { %v250_v52 = vsub.f32 %v856_v57, %v249_v48  ;;  %v271_v1 = vsub.f32 %v838_v31, %v270_v55  ;;  %v340_v48 = vand.u32 2147483648, %v327_v19 }
 0x330   :  { %v263_v54 = vsel %vm262_vm3, %v681_v29, %v259_v50  ;;  %v911_v56 = vpop.permute.xlu1 %394 }
 0x331   :  { %v268_v59 = vsel %vm265_vm4, %v267_v51, %v263_v54  ;;  %v397_v60 = vmul.f32 %v911_v56, %v847_v41  ;;  %v338_v54 = vand.u32 2147483647, %v327_v19 }
 0x332   :  { %v915_v62 = vmul.f32 %v268_v59, %v250_v52 }
 0x333   :  { %v917_v0 = vmul.f32 %v477_v63, %v397_v60  ;;  %vm339_vm15 = vcmp.eq.f32.partialorder %v338_v54, 8.507059e+37 }
 0x334   :  { %v272_v2 = vmul.f32 %v915_v62, %v915_v62  ;;  %351 = vrot.lane.b32.xlu1 %v915_v62, %s714_s4 }
 0x335   :  { %480 = vrot.lane.b32.xlu0 %v917_v0, %s714_s4 }
 0x336   :  { %v273_v3 = vsub.f32 %v271_v1, %v272_v2  ;;  %v341_v1 = vor.u32 1.1754944e-38, %v340_v48 }
 0x338   :  { %682 = vrsqrt.f32 %v273_v3  ;;  %vm281_vm6 = vcmp.eq.f32.partialorder %v273_v3, inf  ;;  %v284_v15 = vand.u32 2147483648, %v273_v3  ;;  %vm283_vm7 = vcmp.eq.f32.partialorder %v273_v3, 0.0 }
 0x339   :  { %684 = vrcp.f32 %v304_v18 }
 0x33a   :  { %686 = vrcp.f32 %v327_v19 }
 0x33b   :  { %688 = vrcp.f32 %v873_v9 }
 0x33c   :  { %404 = vrot.lane.b32.xlu1 %v883_v10, %s719_s9 }
 0x33d   :  { %500 = vrot.lane.b32.xlu0 %v917_v0, %s716_s6 }
 0x33e   :  { %v683_v4 = vpop.eup %682 }
 0x33f   :  { %v275_v5 = vmul.f32 %v683_v4, %v273_v3  ;;  %v685_v20 = vpop.eup %684 }
 0x340   :  { %v307_v22 = vmul.f32 %v685_v20, %v304_v18  ;;  %v687_v24 = vpop.eup %686  ;;  %vm312_vm8 = vweird.f32 %v685_v20 }
 0x341   :  { %v276_v6 = vmul.f32 %v683_v4, %v275_v5  ;;  %v330_v27 = vmul.f32 %v687_v24, %v327_v19  ;;  %v939_v33 = vpop.eup %688  ;;  %vm313_vm10 = vmor %vm311_vm9, %vm312_vm8  ;;  %vm335_vm11 = vweird.f32 %v687_v24 }
 0x342   :  { %v308_v26 = vsub.f32 1.0, %v307_v22  ;;  %v486_v44 = vmul.f32 %v939_v33, %v873_v9  ;;  %vm945_vm14 = vmor %vm334_vm13, %vm335_vm11  ;;  %vm491_vm3 = vweird.f32 %v939_v33 }
 0x343   :  { %v277_v7 = vmul.f32 0.5, %v276_v6  ;;  %v331_v29 = vsub.f32 1.0, %v330_v27 }
 0x344   :  { %v309_v28 = vmul.f32 %v685_v20, %v308_v26  ;;  %v487_v51 = vsub.f32 1.0, %v486_v44 }
 0x345   :  { %v278_v8 = vsub.f32 1.5, %v277_v7  ;;  %v332_v39 = vmul.f32 %v687_v24, %v331_v29 }
 0x346   :  { %v310_v34 = vadd.f32 %v685_v20, %v309_v28  ;;  %v496_v28 = vand.u32 2147483648, %v873_v9 }
 0x347   :  { %v279_v12 = vmul.f32 %v683_v4, %v278_v8  ;;  %v333_v47 = vadd.f32 %v687_v24, %v332_v39  ;;  %v725_v4 = vmov 7  }
 0x348   :  { %v497_v39 = vor.u32 1.1754944e-38, %v496_v28 }
 0x349   :  { %v280_v13 = vmul.f32 %v279_v12, %v273_v3  ;;  %v337_v63 = vsel %vm945_vm14, %v687_v24, %v333_v47  ;;  %v402_v24 = vmul.f32 %v911_v56, %v873_v9 }
 0x34b   :  { %v282_v16 = vsel %vm281_vm6, %v273_v3, %v280_v13  ;;  %v488_v3 = vmul.f32 %v939_v33, %v487_v51  ;;  %v342_v13 = vsel %vm339_vm15, %v341_v1, %v337_v63  ;;  %vm492_vm6 = vmor %vm490_vm1, %vm491_vm3 }
 0x34c   :  { %v929_v17 = vsel %vm283_vm7, %v284_v15, %v282_v16  ;;  %v494_v16 = vand.u32 2147483647, %v873_v9 }
 0x34d   :  { %357 = vrot.lane.b32.xlu2 %v929_v17, %s714_s4  ;;  %v489_v19 = vadd.f32 %v939_v33, %v488_v3  ;;  %v410_v48 = vmul.f32 %v911_v56, %v929_v17  ;;  %vm516_vm11 = vweird.f32 %v929_v17 }
 0x34e   :  { %vm495_vm7 = vcmp.eq.f32.partialorder %v494_v16, 8.507059e+37 }
 0x34f   :  { %v493_v32 = vsel %vm492_vm6, %v939_v33, %v489_v19 }
 0x355   :  { %321 = vrot.lane.b32.xlu2 %v860_v61, %s716_s6 }
 0x35d   :  { %398 = vrot.lane.b32.xlu2 %v883_v10, %s721_s23 }
 0x365   :  { %412 = vrot.lane.b32.xlu2 %v883_v10, %s722_s1 }
 0x36d   :  { %429 = vperm.xlu2 %661, %v397_v60  }
 0x375   :  { %664 = vset.pattern.permute.xlu2 %v725_v4 }
 0x383   :  { %v292_v25 = vpop.permute.xlu1 %291  ;;  %v296_v10 = vpop.permute.xlu0 %295 }
 0x384   :  { %v294_v30 = vadd.f32 %v292_v25, %v887_v14  ;;  %v314_v14 = vsel %vm313_vm10, %v685_v20, %v310_v34 }
 0x385   :  { %v319_v49 = vsel %vm316_vm12, %v318_v46, %v314_v14 }
 0x386   :  { %v298_v40 = vadd.f32 %v296_v10, %v294_v30 }
 0x38b   :  { %v300_v36 = vpop.permute.xlu1 %299 }
 0x38c   :  { %v302_v45 = vadd.f32 %v300_v36, %v298_v40 }
 0x38e   :  { %v943_v53 = vmul.f32 %v319_v49, %v302_v45  ;;  %v498_v45 = vsel %vm495_vm7, %v497_v39, %v493_v32  ;;  %vm635_vm7 = vcmask 39968  }
 0x39f   :  { %v346_v50 = vpop.permute.xlu0 %345 }
 0x3a0   :  { %v348_v5 = vmul.f32 %v346_v50, %v943_v53 }
 0x3a2   :  { %v349_v20 = vsub.f32 %v856_v57, %v348_v5 }
 0x3a6   :  { %v352_v8 = vpop.permute.xlu1 %351 }
 0x3a7   :  { %v358_v38 = vpop.permute.xlu2 %357  ;;  %v481_v25 = vpop.permute.xlu0 %480 }
 0x3a8   :  { %690 = vrcp.f32 %v358_v38  ;;  %v371_v6 = vand.u32 2147483648, %v358_v38  ;;  %v369_v12 = vand.u32 2147483647, %v358_v38  ;;  %vm365_vm2 = vweird.f32 %v358_v38 }
 0x3a9   :  { %v483_v34 = vmul.f32 %v481_v25, %v860_v61 }
 0x3aa   :  { %v372_v22 = vor.u32 1.1754944e-38, %v371_v6  ;;  %vm370_vm5 = vcmp.eq.f32.partialorder %v369_v12, 8.507059e+37 }
 0x3ae   :  { %v691_v52 = vpop.eup %690  ;;  %v405_v14 = vpop.permute.xlu1 %404 }
 0x3af   :  { %v361_v58 = vmul.f32 %v691_v52, %v358_v38  ;;  %v322_v59 = vpop.permute.xlu2 %321  ;;  %vm366_vm0 = vweird.f32 %v691_v52 }
 0x3b0   :  { %v324_v60 = vmul.f32 %v322_v59, %v943_v53  ;;  %vm367_vm4 = vmor %vm365_vm2, %vm366_vm0  ;;  %vm615_vm2 = vcmask 31744  }
 0x3b1   :  { %v362_v2 = vsub.f32 1.0, %v361_v58 }
 0x3b2   :  { %v325_v7 = vsub.f32 %v897_v37, %v324_v60  ;;  %v375_v37 = vmul.f32 %v943_v53, %v943_v53 }
 0x3b3   :  { %v363_v11 = vmul.f32 %v691_v52, %v362_v2 }
 0x3b4   :  { %v955_v15 = vmul.f32 %v342_v13, %v325_v7  ;;  %v376_v35 = vsub.f32 %v838_v31, %v375_v37  ;;  %v422_v37 = vlaneseq }
 0x3b5   :  { %v364_v18 = vadd.f32 %v691_v52, %v363_v11 }
 0x3b6   :  { %v354_v23 = vmul.f32 %v352_v8, %v955_v15  ;;  %v377_v29 = vmul.f32 %v955_v15, %v955_v15  ;;  %v416_v60 = vmul.f32 %v405_v14, %v955_v15 }
 0x3b7   :  { %v368_v26 = vsel %vm367_vm4, %v691_v52, %v364_v18  ;;  %v399_v27 = vpop.permute.xlu2 %398 }
 0x3b8   :  { %v373_v30 = vsel %vm370_vm5, %v372_v22, %v368_v26  ;;  %v355_v10 = vsub.f32 %v349_v20, %v354_v23  ;;  %v401_v57 = vmul.f32 %v399_v27, %v860_v61  ;;  %v378_v40 = vsub.f32 %v376_v35, %v377_v29  ;;  %v501_v20 = vpop.permute.xlu0 %500 }
 0x3b9   :  { %v408_v33 = vmul.f32 %v399_v27, %v915_v62  ;;  %v407_v61 = vmul.f32 %v405_v14, %v900_v42  ;;  %v423_v22 = vand.u32 127, %v422_v37  ;;  %v503_v25 = vmul.f32 %v501_v20, %v900_v42 }
 0x3ba   :  { %v978_v36 = vmul.f32 %v373_v30, %v355_v10  ;;  %v403_v38 = vadd.f32 %v402_v24, %v401_v57  ;;  %v522_v24 = vand.u32 2147483648, %v929_v17  ;;  %v520_v26 = vand.u32 2147483647, %v929_v17 }
 0x3bb   :  { %v409_v31 = vadd.f32 %v408_v33, %v407_v61  ;;  %vm424_vm12 = vcmp.eq.s32.totalorder %v423_v22, 0  ;;  %vm434_vm14 = vcmp.eq.s32.totalorder %v423_v22, 1  ;;  %vm444_vm0 = vcmp.eq.s32.totalorder %v423_v22, 2 }
 0x3bc   :  { %v379_v43 = vmul.f32 %v978_v36, %v978_v36  ;;  %439 = vperm.xlu0 %662, %v403_v38   ;;  %v484_v44 = vsub.f32 %v403_v38, %v483_v34  ;;  %v523_v32 = vor.u32 1.1754944e-38, %v522_v24  ;;  %vm521_vm15 = vcmp.eq.f32.partialorder %v520_v26, 8.507059e+37 }
 0x3bd   :  { %v411_v50 = vadd.f32 %v410_v48, %v409_v31  ;;  %vm454_vm1 = vcmp.eq.s32.totalorder %v423_v22, 3 }
 0x3be   :  { %v380_v46 = vsub.f32 %v378_v40, %v379_v43  ;;  %v499_v47 = vmul.f32 %v498_v45, %v484_v44 }
 0x3bf   :  { %v413_v54 = vpop.permute.xlu2 %412  ;;  %v504_v29 = vsub.f32 %v411_v50, %v503_v25 }
 0x3c0   :  { %692 = vrsqrt.f32 %v380_v46  ;;  %506 = vrot.lane.b32.xlu1 %v499_v47, %s714_s4  ;;  %v415_v58 = vmul.f32 %v413_v54, %v943_v53  ;;  %vm388_vm8 = vcmp.eq.f32.partialorder %v380_v46, inf  ;;  %v391_v3 = vand.u32 2147483648, %v380_v46 }
 0x3c1   :  { %vm390_vm9 = vcmp.eq.f32.partialorder %v380_v46, 0.0  ;;  %694 = vlog2.f32 %v873_v9  ;;  %v558_v11 = vmul.f32 %v499_v47, %v499_v47 }
 0x3c2   :  { %v417_v1 = vadd.f32 %v416_v60, %v415_v58  ;;  %696 = vrcp.f32 %v929_v17  ;;  %v669_v60 = vld [vmem:[%s1047_s7] ss:$0 sm:$0xff] }
 0x3c3   :  { %698 = vlog2.f32 %v929_v17 }
 0x3c4   :  { %665 = vset.pattern.permute.xlu0 %v725_v4  ;;  %v418_v4 = vmul.f32 %v399_v27, %v978_v36 }
 0x3c6   :  { %v693_v49 = vpop.eup %692  ;;  %v419_v7 = vadd.f32 %v418_v4, %v417_v1 }
 0x3c7   :  { %v382_v51 = vmul.f32 %v693_v49, %v380_v46  ;;  %v695_v13 = vpop.eup %694  ;;  %v430_v27 = vpop.permute.xlu2 %429 }
 0x3c8   :  { %449 = vperm.xlu1 %663, %v411_v50   ;;  %v579_v16 = vmul.f32 0.6931472, %v695_v13  ;;  %v697_v18 = vpop.eup %696  ;;  %v432_v34 = vsel %vm424_vm12, %v430_v27, 0.0 }
 0x3c9   :  { %v383_v52 = vmul.f32 %v693_v49, %v382_v51  ;;  %v512_v19 = vmul.f32 %v697_v18, %v929_v17  ;;  %vm517_vm10 = vweird.f32 %v697_v18  ;;  %v433_v40 = vadd.f32 %v432_v34, %v826_v21  ;;  %v621_v21 = vld [vmem:[%s1047_s7] sm:$0x1]  ;;  %s728_s7 = smov 125  }
 0x3ca   :  { %vm518_vm13 = vmor %vm516_vm11, %vm517_vm10  ;;  %v624_v17 = vld [vmem:[%s1048_s8] sm:$0x1] }
 0x3cb   :  { %v384_v55 = vmul.f32 0.5, %v383_v52  ;;  %v625_v50 = vsub.f32 %v624_v17, %v621_v21 }
 0x3cd   :  { %v385_v59 = vsub.f32 1.5, %v384_v55  ;;  %v627_v58 = vperm.slane %v625_v50, 0 }
 0x3cf   :  { %v386_v63 = vmul.f32 %v693_v49, %v385_v59 }
 0x3d0   :  { %526 = vrot.lane.b32.xlu1 %v917_v0, %s717_s19 }
 0x3d1   :  { %v387_v2 = vmul.f32 %v386_v63, %v380_v46 }
 0x3d3   :  { %v389_v5 = vsel %vm388_vm8, %v380_v46, %v387_v2 }
 0x3d4   :  { %v992_v6 = vsel %vm390_vm9, %v391_v3, %v389_v5 }
 0x3d5   :  { %v420_v8 = vmul.f32 %v911_v56, %v992_v6  ;;  %v513_v56 = vsub.f32 1.0, %v512_v19  ;;  %v553_v26 = vand.u32 2147483648, %v992_v6  ;;  %vm547_vm4 = vweird.f32 %v992_v6 }
 0x3d7   :  { %v997_v12 = vadd.f32 %v420_v8, %v419_v7  ;;  %v514_v9 = vmul.f32 %v697_v18, %v513_v56 }
 0x3d8   :  { %560 = vrot.lane.b32.xlu1 %v558_v11, %s726_s24 }
 0x3d9   :  { %459 = vperm.xlu2 %664, %v997_v12   ;;  %v515_v23 = vadd.f32 %v697_v18, %v514_v9 }
 0x3db   :  { %v519_v10 = vsel %vm518_vm13, %v697_v18, %v515_v23 }
 0x3dc   :  { %v524_v38 = vsel %vm521_vm15, %v523_v32, %v519_v10 }
 0x3e0   :  { %581 = vrot.lane.b32.xlu1 %v579_v16, %s726_s24 }
 0x3e1   :  { %531 = vrot.lane.b32.xlu2 %v499_v47, %s716_s6  ;;  %v699_v47 = vpop.eup %698 }
 0x3e2   :  { %v586_v48 = vmul.f32 0.6931472, %v699_v47 }
 0x42e   :  { %v440_v57 = vpop.permute.xlu0 %439 }
 0x42f   :  { %v442_v42 = vsel %vm434_vm14, %v440_v57, 0.0  ;;  %v554_v57 = vor.u32 1.1754944e-38, %v553_v26 }
 0x430   :  { %v443_v44 = vadd.f32 %v442_v42, %v433_v40 }
 0x432   :  { %v507_v28 = vpop.permute.xlu1 %506 }
 0x433   :  { %v509_v30 = vmul.f32 %v507_v28, %v915_v62  ;;  %v460_v62 = vpop.permute.xlu2 %459  ;;  %v551_v28 = vand.u32 2147483647, %v992_v6 }
 0x434   :  { %v462_v33 = vsel %vm454_vm1, %v460_v62, 0.0 }
 0x435   :  { %v510_v35 = vsub.f32 %v504_v29, %v509_v30  ;;  %vm552_vm6 = vcmp.eq.f32.partialorder %v551_v28, 8.507059e+37 }
 0x437   :  { %v525_v39 = vmul.f32 %v524_v38, %v510_v35 }
 0x439   :  { %537 = vrot.lane.b32.xlu0 %v525_v39, %s714_s4  ;;  %v564_v43 = vmul.f32 %v525_v39, %v525_v39 }
 0x43a   :  { %v450_v14 = vpop.permute.xlu1 %449 }
 0x43b   :  { %v452_v45 = vsel %vm444_vm0, %v450_v14, 0.0  ;;  %566 = vrot.lane.b32.xlu2 %v564_v43, %s727_s0  ;;  %v532_v23 = vpop.permute.xlu2 %531 }
 0x43c   :  { %v453_v46 = vadd.f32 %v452_v45, %v443_v44  ;;  %v534_v27 = vmul.f32 %v532_v23, %v955_v15 }
 0x43e   :  { %v463_v61 = vadd.f32 %v462_v33, %v453_v46 }
 0x440   :  { %v602_v31 = vmul.f32 -2.0, %v463_v61  ;;  %700 = vtanh.f32 %v463_v61  ;;  %v612_v11 = vsub.f32 0.6931472, %v463_v61 }
 0x442   :  { %v604_v49 = vand.u32 2147483647, %v602_v31  ;;  %v603_v5 = vmax.f32 %v602_v31, 0.0  ;;  %v527_v9 = vpop.permute.xlu1 %526 }
 0x443   :  { %588 = vrot.lane.b32.xlu2 %v586_v48, %s727_s0  ;;  %v529_v20 = vmul.f32 %v527_v9, %v943_v53 }
 0x444   :  { %v605_v51 = vsub.f32 0.0, %v604_v49 }
 0x445   :  { %v530_v24 = vsub.f32 %v997_v12, %v529_v20 }
 0x446   :  { %v701_v52 = vpop.eup %700  ;;  %v606_v54 = vmul.f32 1.442695, %v605_v51 }
 0x447   :  { %v622_v55 = vadd.f32 1.0, %v701_v52  ;;  %v535_v30 = vsub.f32 %v530_v24, %v534_v27 }
 0x448   :  { %702 = vpow2.f32 %v606_v54 }
 0x449   :  { %v623_v59 = vmul.f32 0.5, %v622_v55 }
 0x44a   :  { %v561_v42 = vpop.permute.xlu1 %560 }
 0x44b   :  { %v629_v63 = vmul.f32 %v627_v58, %v623_v59 }
 0x44d   :  { %v633_v1 = vadd.f32 %v669_v60, %v629_v63 }
 0x44e   :  { %v703_v2 = vpop.eup %702 }
 0x44f   :  { %v608_v3 = vadd.f32 1.0, %v703_v2  ;;  %634 = vst.msk [vmem:[%s1049_s10] sm:$0xff] %vm615_vm2, %v633_v1 }
 0x451   :  { %704 = vlog2.f32 %v608_v3 }
 0x452   :  { %706 = vrcp.f32 %v992_v6  ;;  %v582_v45 = vpop.permute.xlu1 %581 }
 0x453   :  { %708 = vlog2.f32 %v992_v6 }
 0x454   :  { %710 = vlog2.f32 %v847_v41 }
 0x457   :  { %v705_v4 = vpop.eup %704 }
 0x458   :  { %v610_v7 = vmul.f32 0.6931472, %v705_v4  ;;  %v707_v19 = vpop.eup %706 }
 0x459   :  { %v543_v56 = vmul.f32 %v707_v19, %v992_v6  ;;  %vm548_vm3 = vweird.f32 %v707_v19  ;;  %v709_v15 = vpop.eup %708 }
 0x45a   :  { %v611_v8 = vadd.f32 %v610_v7, %v603_v5  ;;  %vm549_vm5 = vmor %vm547_vm4, %vm548_vm3  ;;  %v593_v38 = vmul.f32 0.6931472, %v709_v15  ;;  %v711_v44 = vpop.eup %710 }
 0x45b   :  { %v544_v37 = vsub.f32 1.0, %v543_v56  ;;  %v577_v6 = vmul.f32 0.6931472, %v711_v44 }
 0x45c   :  { %v613_v13 = vsub.f32 %v612_v11, %v611_v8 }
 0x45d   :  { %v545_v22 = vmul.f32 %v707_v19, %v544_v37  ;;  %v584_v33 = vadd.f32 %v582_v45, %v577_v6 }
 0x45e   :  { %v614_v16 = vmul.f32 2.0, %v613_v13 }
 0x45f   :  { %v546_v25 = vadd.f32 %v707_v19, %v545_v22 }
 0x460   :  { %v616_v18 = vsel %vm615_vm2, %v614_v16, 0.0 }
 0x461   :  { %617 = vadd.xlane.f32.xlu1 %v616_v18  ;;  %v550_v53 = vsel %vm549_vm5, %v707_v19, %v546_v25 }
 0x462   :  { %v555_v12 = vsel %vm552_vm6, %v554_v57, %v550_v53 }
 0x495   :  { %v567_v39 = vpop.permute.xlu2 %566 }
 0x49d   :  { %v589_v46 = vpop.permute.xlu2 %588 }
 0x49e   :  { %v591_v61 = vadd.f32 %v589_v46, %v584_v33 }
 0x4ab   :  { %v538_v29 = vpop.permute.xlu0 %537 }
 0x4ac   :  { %v540_v10 = vmul.f32 %v538_v29, %v978_v36  ;;  %v557_v36 = vmul.f32 %v917_v0, %v917_v0 }
 0x4ae   :  { %v541_v32 = vsub.f32 %v535_v30, %v540_v10  ;;  %v563_v40 = vadd.f32 %v561_v42, %v557_v36 }
 0x4b0   :  { %v556_v34 = vmul.f32 %v555_v12, %v541_v32  ;;  %v569_v43 = vadd.f32 %v567_v39, %v563_v40 }
 0x4b2   :  { %v570_v35 = vmul.f32 %v556_v34, %v556_v34 }
 0x4b4   :  { %572 = vrot.lane.b32.xlu0 %v570_v35, %s728_s7 }
 0x4bc   :  { %595 = vrot.lane.b32.xlu0 %v593_v38, %s728_s7 }
 0x4d4   :  { %v618_v41 = vpop.xlane.xlu1 %617 }
 0x526   :  { %v573_v62 = vpop.permute.xlu0 %572 }
 0x527   :  { %v575_v14 = vadd.f32 %v573_v62, %v569_v43 }
 0x529   :  { %v599_v47 = vadd.f32 7.351508, %v575_v14 }
 0x52b   :  { %v600_v21 = vmul.f32 -0.5, %v599_v47 }
 0x52e   :  { %v596_v31 = vpop.permute.xlu0 %595 }
 0x52f   :  { %v598_v17 = vadd.f32 %v596_v31, %v591_v61 }
 0x531   :  { %v601_v48 = vsub.f32 %v600_v21, %v598_v17 }
 0x533   :  { %v619_v49 = vsub.f32 %v601_v48, %v618_v41 }
 0x535   :  { %636 = vst.msk [vmem:[%s1049_s10] sm:$0xff] %vm635_vm7, %v619_v49 }

</bundles_post_ra>
